<compile_context>
chip_gen: v5e
topology: v5e:2x2
jax: 0.10.0
libtpu: 0.0.40
codegen_flags: <defaults>
</compile_context>

<pallas_src>
import functools

import jax
import jax.numpy as jnp
from jax import lax
from jax.experimental import pallas as pl
from jax.experimental.pallas import tpu as pltpu

# ----- model configuration (module defaults; small free choices) -----
N_AGENTS = 4
LOC_N_DIM = 2                     # D
K_LOCATIONS = 20                  # K (module default)
HIDDEN = 128                      # hidden_layer_size default
N_HIDDEN_LAYERS = 2               # default (hard-coded as w1, w2 below)
BATCH = 2
INPUT_SIZE = N_AGENTS * LOC_N_DIM

ALLOC_COLS = K_LOCATIONS * LOC_N_DIM          # 40
HEAD_COLS = ALLOC_COLS + K_LOCATIONS          # 60 (allocs + payments)
HEAD_PAD = 128                                # lane-dense fused head / output width
TILE_B = 2048                                 # batch tile when pipelining


def _device_kind():
    try:
        return jax.devices()[0].device_kind.lower()
    except Exception:
        return ""


_KIND = _device_kind()
# v7x has 2 TensorCores per chip; shard moderate batches across them.
NUM_TC = 2 if "v7" in _KIND else 1
# Single-shot (no grid) only below this padded-batch size.
SINGLE_LIMIT = TILE_B // NUM_TC
# bf16 EUP/VPU path exists on v6e/v7x; keep transcendental math f32 on v5e & older.
ACT_DTYPE = jnp.bfloat16 if ("v6" in _KIND or "v7" in _KIND) else jnp.float32


def _round_up(v, m):
    return ((v + m - 1) // m) * m


def regretnet_kernel(x_ref, w0_ref, b0_ref, w1_ref, b1_ref, w2_ref, b2_ref,
                     wh_ref, bh_ref, g_ref, out_ref, *, act_dtype):
    """3 tanh-MLP matmuls + one fused head matmul producing a (TB, 128) f32 slab
    [alloc logits d0 | alloc logits d1 | payments | zero pad].  Softmax over
    each K-lane allocation group is computed on the full slab (no lane-offset
    slices / concatenate): full-slab exp, group sums via a 0/1 membership
    matmul on the otherwise-idle MXU, one masked select, one bf16 store."""
    f32 = jnp.float32
    bf16 = jnp.bfloat16

    def act(z):
        # z is the f32 matmul accumulate + bias.  tanh runs on bf16 operands on
        # v6e/v7x (~2x EUP throughput), f32 on v5e; next-matmul operand is bf16.
        return jnp.tanh(z.astype(act_dtype)).astype(bf16)

    x = x_ref[...]                                                     # (TB, 8) bf16
    h = act(jnp.dot(x, w0_ref[...], preferred_element_type=f32) + b0_ref[...])
    h = act(jnp.dot(h, w1_ref[...], preferred_element_type=f32) + b1_ref[...])
    h = act(jnp.dot(h, w2_ref[...], preferred_element_type=f32) + b2_ref[...])

    heads = jnp.dot(h, wh_ref[...], preferred_element_type=f32) + bh_ref[...]  # (TB,128) f32

    col = lax.broadcasted_iota(jnp.int32, (1, HEAD_PAD), 1)
    alloc_mask = col < ALLOC_COLS                                      # (1, 128)

    # exp over the whole slab: the EUP processes full vregs anyway, so this is
    # cheaper than exp on two lane-offset slices.  Max-subtraction is dropped:
    # h is tanh-bounded and weights are glorot-scale, so |logit| <= ~24 and f32
    # exp cannot overflow.
    e = jnp.exp(heads.astype(act_dtype))                               # (TB,128)
    e_alloc = jnp.where(alloc_mask, e, jnp.zeros_like(e))
    # per-group (20-lane) sums broadcast back to their own lanes via one small
    # 0/1 group-membership matmul on the otherwise-idle MXU.
    denom = jnp.dot(e_alloc, g_ref[...].astype(e_alloc.dtype),
                    preferred_element_type=f32)                        # (TB,128) f32
    denom = jnp.where(alloc_mask, denom, 1.0)
    # NOTE: approx reciprocal -> softmax rows sum to 1 only to ~1e-3; switch to
    # approx=False (or renormalize) if exact probabilities are required.
    out = jnp.where(alloc_mask, e * pl.reciprocal(denom, approx=True), heads)
    out_ref[...] = out.astype(out_ref.dtype)


def init_params(key):
    """Deterministic glorot-style init. Weights stored as (in, out), f32."""
    ks = jax.random.split(key, 5)

    def glorot(k, shape, fan_in, fan_out):
        lim = jnp.sqrt(6.0 / (fan_in + fan_out))
        return jax.random.uniform(k, shape, jnp.float32, -lim, lim)

    w0 = glorot(ks[0], (INPUT_SIZE, HIDDEN), INPUT_SIZE, HIDDEN)
    b0 = jnp.zeros((1, HIDDEN), jnp.float32)
    w1 = glorot(ks[1], (HIDDEN, HIDDEN), HIDDEN, HIDDEN)
    b1 = jnp.zeros((1, HIDDEN), jnp.float32)
    w2 = glorot(ks[2], (HIDDEN, HIDDEN), HIDDEN, HIDDEN)
    b2 = jnp.zeros((1, HIDDEN), jnp.float32)
    # allocation head weights arranged as (D, H, K); PyTorch fan counts.
    wa = glorot(ks[3], (LOC_N_DIM, HIDDEN, K_LOCATIONS),
                HIDDEN, K_LOCATIONS * LOC_N_DIM)
    ba = jnp.zeros((LOC_N_DIM, 1, K_LOCATIONS), jnp.float32)
    wp = glorot(ks[4], (HIDDEN, K_LOCATIONS), HIDDEN, K_LOCATIONS)
    bp = jnp.zeros((1, K_LOCATIONS), jnp.float32)
    return (w0, b0, w1, b1, w2, b2, wa, ba, wp, bp)


def pack_params(params):
    """One-time packing: fuse the head weights into a zero-padded (H, 128)
    matrix, cast matmul weights to bf16 (biases stay f32), and build the
    (128, 128) 0/1 softmax group-membership matrix."""
    w0, b0, w1, b1, w2, b2, wa, ba, wp, bp = params
    bf16 = jnp.bfloat16

    wh = jnp.zeros((HIDDEN, HEAD_PAD), jnp.float32)
    wh = wh.at[:, 0:K_LOCATIONS].set(wa[0])
    wh = wh.at[:, K_LOCATIONS:2 * K_LOCATIONS].set(wa[1])
    wh = wh.at[:, 2 * K_LOCATIONS:3 * K_LOCATIONS].set(wp)

    bh = jnp.zeros((1, HEAD_PAD), jnp.float32)
    bh = bh.at[:, 0:K_LOCATIONS].set(ba[0])
    bh = bh.at[:, K_LOCATIONS:2 * K_LOCATIONS].set(ba[1])
    bh = bh.at[:, 2 * K_LOCATIONS:3 * K_LOCATIONS].set(bp)

    c = jnp.arange(HEAD_PAD)
    in_alloc = c < ALLOC_COLS
    grp = c // K_LOCATIONS
    gmat = ((grp[:, None] == grp[None, :])
            & in_alloc[:, None] & in_alloc[None, :]).astype(bf16)      # (128,128) 0/1

    return (w0.astype(bf16), b0, w1.astype(bf16), b1, w2.astype(bf16), b2,
            wh.astype(bf16), bh, gmat)


def _resident_spec(a):
    nd = a.ndim
    return pl.BlockSpec(a.shape, lambda i, _nd=nd: (0,) * _nd)


_KERNEL = functools.partial(regretnet_kernel, act_dtype=ACT_DTYPE)


@jax.jit
def regretnet_forward(reports, packed):
    B = reports.shape[0]
    x = reports.reshape(B, INPUT_SIZE).astype(jnp.float32)

    # pad batch so sublane layouts are full; padded rows are free filler.
    B8 = max(8, _round_up(B, 8))
    if B8 <= SINGLE_LIMIT:
        tiled, BP, tb = False, B8, B8
    else:
        if NUM_TC == 1:
            tb = TILE_B
        else:  # v7x: split moderate batches across both TensorCores
            tb = min(TILE_B, max(256, _round_up(-(-B8 // NUM_TC), 256)))
        BP = _round_up(B8, tb)
        tiled = True

    x_pad = jnp.pad(x, ((0, BP - B), (0, 0))).astype(jnp.bfloat16)
    args = (x_pad,) + packed
    out_shape = jax.ShapeDtypeStruct((BP, HEAD_PAD), jnp.bfloat16)

    if not tiled:
        # small batch: single-shot call, whole arrays resident in VMEM,
        # no pipeline/double-buffer bookkeeping.
        heads = pl.pallas_call(_KERNEL, out_shape=out_shape)(*args)
    else:
        # large batch: pipeline activation tiles, keep weights resident,
        # batch axis parallel (sharded across TensorCores on v7x).
        weight_specs = [_resident_spec(a) for a in packed]
        heads = pl.pallas_call(
            _KERNEL,
            out_shape=out_shape,
            grid=(BP // tb,),
            in_specs=[pl.BlockSpec((tb, INPUT_SIZE), lambda i: (i, 0))] + weight_specs,
            out_specs=pl.BlockSpec((tb, HEAD_PAD), lambda i: (i, 0)),
            compiler_params=pltpu.CompilerParams(
                dimension_semantics=("parallel",),
                vmem_limit_bytes=32 * 1024 * 1024),
        )(*args)

    heads = heads[:B].astype(jnp.float32)
    # allocs: cols [0:2K) grouped by d -> (B, D, K) -> (B, K, D) -> View_Cut
    allocs_full = jnp.transpose(
        heads[:, :ALLOC_COLS].reshape(B, LOC_N_DIM, K_LOCATIONS), (0, 2, 1))
    allocs = allocs_full[:, :-1, :]
    payments = heads[:, ALLOC_COLS:HEAD_COLS]
    return allocs, payments


def reference_forward(reports, params, matmul_dtype=jnp.float32,
                      act_dtype=jnp.float32):
    """Pure-JAX reference mirroring the PyTorch semantics. matmul_dtype /
    act_dtype = bf16 reproduces the kernel's MXU / EUP operand precision for
    a tight check; f32 gives the exact module semantics."""
    w0, b0, w1, b1, w2, b2, wa, ba, wp, bp = params
    c = lambda a: a.astype(matmul_dtype)
    dot = lambda a, b: jnp.dot(c(a), c(b), preferred_element_type=jnp.float32)
    act = lambda z: jnp.tanh(z.astype(act_dtype)).astype(jnp.float32)
    B = reports.shape[0]
    x = reports.reshape(B, INPUT_SIZE)
    h = act(dot(x, w0) + b0)
    h = act(dot(h, w1) + b1)
    h = act(dot(h, w2) + b2)
    logits = jnp.stack([dot(h, wa[d]) + ba[d] for d in range(LOC_N_DIM)], axis=-1)  # (B,K,D)
    allocs_full = jax.nn.softmax(logits, axis=1)
    allocs = allocs_full[:, :-1, :]                       # ibp.View_Cut()
    payments = dot(h, wp) + bp
    return allocs, payments


if __name__ == "__main__":
    key = jax.random.PRNGKey(0)
    pkey, xkey, xkey2 = jax.random.split(key, 3)
    params = init_params(pkey)
    packed = pack_params(params)

    # ---- small batch: single-shot (whole-VMEM) path ----
    reports = jax.random.uniform(xkey, (BATCH, N_AGENTS, LOC_N_DIM), jnp.float32)
    allocs, payments = regretnet_forward(reports, packed)
    jax.block_until_ready((allocs, payments))

    assert allocs.shape == (BATCH, K_LOCATIONS - 1, LOC_N_DIM)
    assert payments.shape == (BATCH, K_LOCATIONS)

    # tight check against a precision-matched (bf16 matmul / device act dtype) reference
    ref_a_m, ref_p_m = reference_forward(reports, params, jnp.bfloat16, ACT_DTYPE)
    assert jnp.allclose(allocs, ref_a_m, atol=2e-2, rtol=2e-2)
    assert jnp.allclose(payments, ref_p_m, atol=4e-2, rtol=4e-2)

    # looser check against the exact f32 module semantics
    ref_a, ref_p = reference_forward(reports, params)
    assert jnp.allclose(allocs, ref_a, atol=6e-2, rtol=6e-2)
    assert jnp.allclose(payments, ref_p, atol=8e-2, rtol=8e-2)

    # ---- moderate batch: exercises the tiled / pipelined grid path ----
    B2 = 2304
    reports2 = jax.random.uniform(xkey2, (B2, N_AGENTS, LOC_N_DIM), jnp.float32)
    allocs2, payments2 = regretnet_forward(reports2, packed)
    jax.block_until_ready((allocs2, payments2))

    assert allocs2.shape == (B2, K_LOCATIONS - 1, LOC_N_DIM)
    assert payments2.shape == (B2, K_LOCATIONS)

    ref_a2, ref_p2 = reference_forward(reports2, params, jnp.bfloat16, ACT_DTYPE)
    assert jnp.allclose(allocs2, ref_a2, atol=4e-2, rtol=4e-2)
    assert jnp.allclose(payments2, ref_p2, atol=8e-2, rtol=5e-2)

    print("KERNEL_OK")
</pallas_src>

<mosaic_0001>
module attributes {stable_mosaic.version = 11 : i64} {
  func.func @regretnet_kernel(%arg0: memref<8x8xbf16, #tpu.memory_space<vmem>>, %arg1: memref<8x128xbf16, #tpu.memory_space<vmem>>, %arg2: memref<1x128xf32, #tpu.memory_space<vmem>>, %arg3: memref<128x128xbf16, #tpu.memory_space<vmem>>, %arg4: memref<1x128xf32, #tpu.memory_space<vmem>>, %arg5: memref<128x128xbf16, #tpu.memory_space<vmem>>, %arg6: memref<1x128xf32, #tpu.memory_space<vmem>>, %arg7: memref<128x128xbf16, #tpu.memory_space<vmem>>, %arg8: memref<1x128xf32, #tpu.memory_space<vmem>>, %arg9: memref<128x128xbf16, #tpu.memory_space<vmem>>, %arg10: memref<8x128xbf16, #tpu.memory_space<vmem>>) attributes {dimension_semantics = [], scalar_prefetch = 0 : i64, scratch_operands = 0 : i64, tpu.core_type = #tpu.core_type<tc>} {
    %c0 = arith.constant 0 : index
    %c0_0 = arith.constant 0 : index
    %0 = vector.load %arg0[%c0, %c0_0] : memref<8x8xbf16, #tpu.memory_space<vmem>>, vector<8x8xbf16>
    %c0_1 = arith.constant 0 : index
    %c0_2 = arith.constant 0 : index
    %1 = vector.load %arg1[%c0_1, %c0_2] : memref<8x128xbf16, #tpu.memory_space<vmem>>, vector<8x128xbf16>
    %cst = arith.constant dense<0.000000e+00> : vector<8x128xf32>
    %2 = tpu.matmul %0, %1, %cst {dimension_numbers = #tpu.dot_dimension_numbers<[1], [0], [0], [1], [0, 0, 1, 1], [], []>} : vector<8x8xbf16>, vector<8x128xbf16>, vector<8x128xf32> -> vector<8x128xf32>
    %c0_3 = arith.constant 0 : index
    %c0_4 = arith.constant 0 : index
    %3 = vector.load %arg2[%c0_3, %c0_4] : memref<1x128xf32, #tpu.memory_space<vmem>>, vector<1x128xf32>
    %4 = vector.broadcast %3 : vector<1x128xf32> to vector<8x128xf32>
    %5 = arith.addf %2, %4 : vector<8x128xf32>
    %6 = math.tanh %5 : vector<8x128xf32>
    %7 = arith.truncf %6 : vector<8x128xf32> to vector<8x128xbf16>
    %c0_5 = arith.constant 0 : index
    %c0_6 = arith.constant 0 : index
    %8 = vector.load %arg3[%c0_5, %c0_6] : memref<128x128xbf16, #tpu.memory_space<vmem>>, vector<128x128xbf16>
    %cst_7 = arith.constant dense<0.000000e+00> : vector<8x128xf32>
    %9 = tpu.matmul %7, %8, %cst_7 {dimension_numbers = #tpu.dot_dimension_numbers<[1], [0], [0], [1], [0, 0, 1, 1], [], []>} : vector<8x128xbf16>, vector<128x128xbf16>, vector<8x128xf32> -> vector<8x128xf32>
    %c0_8 = arith.constant 0 : index
    %c0_9 = arith.constant 0 : index
    %10 = vector.load %arg4[%c0_8, %c0_9] : memref<1x128xf32, #tpu.memory_space<vmem>>, vector<1x128xf32>
    %11 = vector.broadcast %10 : vector<1x128xf32> to vector<8x128xf32>
    %12 = arith.addf %9, %11 : vector<8x128xf32>
    %13 = math.tanh %12 : vector<8x128xf32>
    %14 = arith.truncf %13 : vector<8x128xf32> to vector<8x128xbf16>
    %c0_10 = arith.constant 0 : index
    %c0_11 = arith.constant 0 : index
    %15 = vector.load %arg5[%c0_10, %c0_11] : memref<128x128xbf16, #tpu.memory_space<vmem>>, vector<128x128xbf16>
    %cst_12 = arith.constant dense<0.000000e+00> : vector<8x128xf32>
    %16 = tpu.matmul %14, %15, %cst_12 {dimension_numbers = #tpu.dot_dimension_numbers<[1], [0], [0], [1], [0, 0, 1, 1], [], []>} : vector<8x128xbf16>, vector<128x128xbf16>, vector<8x128xf32> -> vector<8x128xf32>
    %c0_13 = arith.constant 0 : index
    %c0_14 = arith.constant 0 : index
    %17 = vector.load %arg6[%c0_13, %c0_14] : memref<1x128xf32, #tpu.memory_space<vmem>>, vector<1x128xf32>
    %18 = vector.broadcast %17 : vector<1x128xf32> to vector<8x128xf32>
    %19 = arith.addf %16, %18 : vector<8x128xf32>
    %20 = math.tanh %19 : vector<8x128xf32>
    %21 = arith.truncf %20 : vector<8x128xf32> to vector<8x128xbf16>
    %c0_15 = arith.constant 0 : index
    %c0_16 = arith.constant 0 : index
    %22 = vector.load %arg7[%c0_15, %c0_16] : memref<128x128xbf16, #tpu.memory_space<vmem>>, vector<128x128xbf16>
    %cst_17 = arith.constant dense<0.000000e+00> : vector<8x128xf32>
    %23 = tpu.matmul %21, %22, %cst_17 {dimension_numbers = #tpu.dot_dimension_numbers<[1], [0], [0], [1], [0, 0, 1, 1], [], []>} : vector<8x128xbf16>, vector<128x128xbf16>, vector<8x128xf32> -> vector<8x128xf32>
    %c0_18 = arith.constant 0 : index
    %c0_19 = arith.constant 0 : index
    %24 = vector.load %arg8[%c0_18, %c0_19] : memref<1x128xf32, #tpu.memory_space<vmem>>, vector<1x128xf32>
    %25 = vector.broadcast %24 : vector<1x128xf32> to vector<8x128xf32>
    %26 = arith.addf %23, %25 : vector<8x128xf32>
    %27 = tpu.iota {dimensions = array<i32: 1>} : vector<1x128xi32>
    %c40_i32 = arith.constant 40 : i32
    %28 = vector.broadcast %c40_i32 : i32 to vector<1x128xi32>
    %29 = arith.cmpi slt, %27, %28 : vector<1x128xi32>
    %30 = math.exp %26 : vector<8x128xf32>
    %cst_20 = arith.constant 0.000000e+00 : f32
    %31 = vector.broadcast %cst_20 : f32 to vector<8x128xf32>
    %32 = vector.shape_cast %29 : vector<1x128xi1> to vector<1x128xi1>
    %33 = vector.broadcast %32 : vector<1x128xi1> to vector<8x128xi1>
    %34 = arith.select %33, %30, %31 : vector<8x128xi1>, vector<8x128xf32>
    %c0_21 = arith.constant 0 : index
    %c0_22 = arith.constant 0 : index
    %35 = vector.load %arg9[%c0_21, %c0_22] : memref<128x128xbf16, #tpu.memory_space<vmem>>, vector<128x128xbf16>
    %36 = arith.extf %35 : vector<128x128xbf16> to vector<128x128xf32>
    %cst_23 = arith.constant dense<0.000000e+00> : vector<8x128xf32>
    %37 = tpu.matmul %34, %36, %cst_23 {dimension_numbers = #tpu.dot_dimension_numbers<[1], [0], [0], [1], [0, 0, 1, 1], [], []>} : vector<8x128xf32>, vector<128x128xf32>, vector<8x128xf32> -> vector<8x128xf32>
    %cst_24 = arith.constant 1.000000e+00 : f32
    %38 = vector.shape_cast %29 : vector<1x128xi1> to vector<1x128xi1>
    %39 = vector.broadcast %38 : vector<1x128xi1> to vector<8x128xi1>
    %40 = vector.broadcast %cst_24 : f32 to vector<8x128xf32>
    %41 = arith.select %39, %37, %40 : vector<8x128xi1>, vector<8x128xf32>
    %42 = tpu.reciprocal %41 {approx = true} : vector<8x128xf32> -> vector<8x128xf32>
    %43 = arith.mulf %30, %42 : vector<8x128xf32>
    %44 = vector.shape_cast %29 : vector<1x128xi1> to vector<1x128xi1>
    %45 = vector.broadcast %44 : vector<1x128xi1> to vector<8x128xi1>
    %46 = arith.select %45, %43, %26 : vector<8x128xi1>, vector<8x128xf32>
    %47 = arith.truncf %46 : vector<8x128xf32> to vector<8x128xbf16>
    %c0_25 = arith.constant 0 : index
    %c0_26 = arith.constant 0 : index
    %48 = vector.load %arg10[%c0_25, %c0_26] : memref<8x128xbf16, #tpu.memory_space<vmem>>, vector<8x128xbf16>
    tpu.vector_store %arg10[%c0_25, %c0_26], %47 {strides = array<i32>} : memref<8x128xbf16, #tpu.memory_space<vmem>>, vector<8x128xbf16>,
    return
  }
}

</mosaic_0001>

<bundles_post_ra>
// kernel: regretnet_forward.1
= control target key start
LH: loop header
LB: loop body
LE: loop exit
PB: predicated region body
PF: predicated region fallthrough
CT: control target
= control target key end

     0   :  { %15 = vsyncpa [#allocation3], 0  ;;  %s825_s0 = inlined_call_operand.vmem [shape: bf16[8,8], index: 0, kind: input, shape index: {}]   ;;  %s826_s1 = inlined_call_operand.vmem [shape: bf16[8,128], index: 1, kind: input, shape index: {}]   ;;  %s827_s2 = inlined_call_operand.vmem [shape: f32[1,128], index: 2, kind: input, shape index: {}]   ;;  %s828_s3 = inlined_call_operand.hbm [shape: bf16[128,128], index: 3, kind: input, shape index: {}]   ;;  %s829_s4 = inlined_call_operand.vmem [shape: f32[1,128], index: 4, kind: input, shape index: {}]   ;;  %s830_s5 = inlined_call_operand.hbm [shape: bf16[128,128], index: 5, kind: input, shape index: {}]   ;;  %s831_s6 = inlined_call_operand.vmem [shape: f32[1,128], index: 6, kind: input, shape index: {}]   ;;  %s832_s7 = inlined_call_operand.hbm [shape: bf16[128,128], index: 7, kind: input, shape index: {}]   ;;  %s833_s8 = inlined_call_operand.vmem [shape: f32[1,128], index: 8, kind: input, shape index: {}]   ;;  %s834_s9 = inlined_call_operand.hbm [shape: bf16[128,128], index: 9, kind: input, shape index: {}]   ;;  %s835_s10 = inlined_call_operand.vmem [shape: bf16[8,128], index: 10, kind: output, shape index: {}]  }
   0x1   :  { %16 = vsyncpa [#allocation5], 0 }
   0x2   :  { %17 = vsyncpa [#allocation8], 0  ;;  %s43_s15 = sshll.u32 %s830_s5, 4  ;;  %s731_s16 = smov [#allocation4]   ;;  %s44_s15 = int_to_ptr.hbm [resolvable:$true] %s43_s15 }
   0x3   :  { %s45_s17 = sshll.u32 %s731_s16, 4  ;;  %s28_s20 = sshll.u32 %s828_s3, 4  ;;  %s46_s17 = int_to_ptr.vmem [resolvable:$true] %s45_s17  ;;  %s29_s20 = int_to_ptr.hbm [resolvable:$true] %s28_s20 }
   0x4   :  { %s732_s21 = smov 64   ;;  %s733_s22 = smov 4  }
   0x5   :  { %51 = dma.hbm_to_vmem [thread:$0]  %s44_s15, 1024, %s46_s17, [#allocation5], %s732_s21, %s732_s21, %s733_s22  }
   0x6   :  { %s734_s23 = smov [#allocation2]   ;;  %s58_s27 = sshll.u32 %s832_s7, 4  ;;  %s59_s27 = int_to_ptr.hbm [resolvable:$true] %s58_s27 }
   0x7   :  { %s30_s24 = sshll.u32 %s734_s23, 4  ;;  %s73_s29 = sshll.u32 %s834_s9, 4  ;;  %s31_s24 = int_to_ptr.vmem [resolvable:$true] %s30_s24  ;;  %s74_s29 = int_to_ptr.hbm [resolvable:$true] %s73_s29 }
   0x8   :  { %36 = dma.hbm_to_vmem [thread:$0]  %s29_s20, 1024, %s31_s24, [#allocation3], %s732_s21, %s732_s21, %s733_s22  }
   0x9   :  { %s735_s30 = smov [#allocation6]   ;;  %s736_s3 = smov [#allocation7]  }
   0xa   :  { %s60_s11 = sshll.u32 %s735_s30, 4  ;;  %s75_s12 = sshll.u32 %s736_s3, 4  ;;  %s61_s11 = int_to_ptr.vmem [resolvable:$true] %s60_s11  ;;  %s76_s12 = int_to_ptr.vmem [resolvable:$true] %s75_s12 }
   0xb   :  { %66 = dma.hbm_to_vmem [thread:$0]  %s59_s27, 1024, %s61_s11, [#allocation5], %s732_s21, %s732_s21, %s733_s22  }
   0xc   :  { %81 = dma.hbm_to_vmem [thread:$0]  %s74_s29, 1024, %s76_s12, [#allocation8], %s732_s21, %s732_s21, %s733_s22  }
   0xd   :  { %725 = dma.done.wait [#allocation3], 1024  }
   0xe   :  { %726 = vsyncadd [#allocation3], 4294966272 }
   0xf   :  { %727 = dma.done.wait [#allocation5], 2048  }
  0x10   :  { %728 = vsyncadd [#allocation5], 4294965248 }
  0x11   :  { %729 = dma.done.wait [#allocation8], 1024  }
  0x12   :  { %730 = vsyncadd [#allocation8], 4294966272  ;;  %vm109_vm0 = vcmask 1043456   ;;  %v100_v0 = vld [vmem:[%s826_s1] sm:$0xf]  ;;  %v553_v1 = vld [vmem:[#allocation2 + $0x38] sm:$0xff] }
  0x13   :  { %v111_v2 = vsel %vm109_vm0, %v100_v0, 0  ;;  %v99_v3 = vld [vmem:[%s825_s0] sm:$0xf]  ;;  %vm105_vm1 = vcmask 64512   ;;  %196 = vmatpush.bf16.msra.mxu1 %v553_v1  ;;  %v552_v4 = vld [vmem:[#allocation2 + $0x30] sm:$0xff]  ;;  %v551_v5 = vld [vmem:[#allocation2 + $0x28] sm:$0xff] }
  0x14   :  { %120 = vmatpush.bf16.msra.mxu0 %v111_v2  ;;  %v550_v6 = vld [vmem:[#allocation2 + $0x20] sm:$0xff]  ;;  %v549_v7 = vld [vmem:[#allocation2 + $0x18] sm:$0xff]  ;;  %v548_v8 = vld [vmem:[#allocation2 + $0x10] sm:$0xff] }
  0x15   :  { %v547_v9 = vld [vmem:[#allocation2 + $0x8] sm:$0xff]  ;;  %v546_v10 = vld [vmem:[#allocation2] sm:$0xff]  ;;  %v561_v11 = vld [vmem:[#allocation4 + $0x38] sm:$0xff] }
  0x16   :  { %279 = vmatpush.bf16.msra.mxu2 %v561_v11  ;;  %v560_v12 = vld [vmem:[#allocation4 + $0x30] sm:$0xff]  ;;  %v559_v13 = vld [vmem:[#allocation4 + $0x28] sm:$0xff]  ;;  %v558_v14 = vld [vmem:[#allocation4 + $0x20] sm:$0xff] }
  0x17   :  { %448 = vmatmul.msk.bf16.vlgmr.msra.gmra.mxu0 %vm105_vm1, %v99_v3  ;;  %197 = vmatpush.bf16.msra.mxu1 %v552_v4  ;;  %v557_v15 = vld [vmem:[#allocation4 + $0x18] sm:$0xff]  ;;  %v615_v16 = vld [vmem:[%s827_s2] ss:$0 sm:$0xff]  ;;  %v556_v22 = vld [vmem:[#allocation4 + $0x10] sm:$0xff] }
  0x18   :  { %v555_v23 = vld [vmem:[#allocation4 + $0x8] sm:$0xff]  ;;  %v554_v24 = vld [vmem:[#allocation4] sm:$0xff]  ;;  %v569_v25 = vld [vmem:[#allocation6 + $0x38] sm:$0xff] }
  0x19   :  { %362 = vmatpush.bf16.msra.mxu3 %v569_v25  ;;  %v568_v26 = vld [vmem:[#allocation6 + $0x30] sm:$0xff]  ;;  %v567_v27 = vld [vmem:[#allocation6 + $0x28] sm:$0xff]  ;;  %v566_v28 = vld [vmem:[#allocation6 + $0x20] sm:$0xff] }
  0x1a   :  { %280 = vmatpush.bf16.msra.mxu2 %v560_v12  ;;  %v565_v29 = vld [vmem:[#allocation6 + $0x18] sm:$0xff]  ;;  %v616_v30 = vld [vmem:[%s829_s4] ss:$0 sm:$0xff]  ;;  %v564_v36 = vld [vmem:[#allocation6 + $0x10] sm:$0xff] }
  0x1b   :  { %198 = vmatpush.bf16.msra.mxu1 %v551_v5  ;;  %v563_v37 = vld [vmem:[#allocation6 + $0x8] sm:$0xff]  ;;  %v562_v38 = vld [vmem:[#allocation6] sm:$0xff]  ;;  %v608_v39 = vld [vmem:[#allocation7 + $0x38] sm:$0xff]  }
  0x1c   :  { %v607_v40 = vld [vmem:[#allocation7 + $0x30] sm:$0xff]   ;;  %v601_v41 = vunpack.c.h.bf16 %v608_v39  ;;  %v600_v42 = vunpack.c.l.bf16 %v608_v39  ;;  %v606_v44 = vld [vmem:[#allocation7 + $0x28] sm:$0xff]   ;;  %v605_v47 = vld [vmem:[#allocation7 + $0x20] sm:$0xff]  }
  0x1d   :  { %363 = vmatpush.bf16.msra.mxu3 %v568_v26  ;;  %v597_v43 = vunpack.c.h.bf16 %v607_v40  ;;  %v596_v45 = vunpack.c.l.bf16 %v607_v40  ;;  %v593_v46 = vunpack.c.h.bf16 %v606_v44  ;;  %v592_v48 = vunpack.c.l.bf16 %v606_v44  ;;  %v604_v50 = vld [vmem:[#allocation7 + $0x18] sm:$0xff]   ;;  %v617_v53 = vld [vmem:[%s831_s6] ss:$0 sm:$0xff]  ;;  %v603_v60 = vld [vmem:[#allocation7 + $0x10] sm:$0xff]  }
  0x1e   :  { %281 = vmatpush.bf16.msra.mxu2 %v559_v13  ;;  %415 = vmatpush.msrb.mxu0 %v601_v41  ;;  %v589_v49 = vunpack.c.h.bf16 %v605_v47  ;;  %v588_v51 = vunpack.c.l.bf16 %v605_v47  ;;  %v585_v52 = vunpack.c.h.bf16 %v604_v50  ;;  %v584_v54 = vunpack.c.l.bf16 %v604_v50  ;;  %v602_v63 = vld [vmem:[#allocation7 + $0x8] sm:$0xff]   ;;  %v571_v2 = vld [vmem:[#allocation7] sm:$0xff]  }
  0x1f   :  { %199 = vmatpush.bf16.msra.mxu1 %v550_v6  ;;  %v581_v61 = vunpack.c.h.bf16 %v603_v60  ;;  %v580_v62 = vunpack.c.l.bf16 %v603_v60  ;;  %v577_v0 = vunpack.c.h.bf16 %v602_v63  ;;  %v576_v1 = vunpack.c.l.bf16 %v602_v63  ;;  %v618_v5 = vld [vmem:[%s833_s8] ss:$0 sm:$0xff] }
  0x20   :  { %416 = vmatpush.msrb.mxu0 %v600_v42  ;;  %v573_v3 = vunpack.c.h.bf16 %v571_v2  ;;  %v572_v4 = vunpack.c.l.bf16 %v571_v2 }
  0x21   :  { %364 = vmatpush.bf16.msra.mxu3 %v567_v27 }
  0x22   :  { %282 = vmatpush.bf16.msra.mxu2 %v558_v14  ;;  %417 = vmatpush.msrb.mxu0 %v597_v43 }
  0x23   :  { %200 = vmatpush.bf16.msra.mxu1 %v549_v7 }
  0x24   :  { %418 = vmatpush.msrb.mxu0 %v596_v45 }
  0x25   :  { %365 = vmatpush.bf16.msra.mxu3 %v566_v28 }
  0x26   :  { %283 = vmatpush.bf16.msra.mxu2 %v557_v15  ;;  %419 = vmatpush.msrb.mxu0 %v593_v46 }
  0x27   :  { %201 = vmatpush.bf16.msra.mxu1 %v548_v8  ;;  %v375_v8 = vlaneseq }
  0x28   :  { %420 = vmatpush.msrb.mxu0 %v592_v48 }
  0x29   :  { %366 = vmatpush.bf16.msra.mxu3 %v565_v29 }
  0x2a   :  { %284 = vmatpush.bf16.msra.mxu2 %v556_v22  ;;  %421 = vmatpush.msrb.mxu0 %v589_v49 }
  0x2b   :  { %202 = vmatpush.bf16.msra.mxu1 %v547_v9 }
  0x2c   :  { %422 = vmatpush.msrb.mxu0 %v588_v51 }
  0x2d   :  { %367 = vmatpush.bf16.msra.mxu3 %v564_v36 }
  0x2e   :  { %285 = vmatpush.bf16.msra.mxu2 %v555_v23  ;;  %423 = vmatpush.msrb.mxu0 %v585_v52 }
  0x2f   :  { %203 = vmatpush.bf16.msra.mxu1 %v546_v10  ;;  %v376_v10 = vand.u32 127, %v375_v8 }
  0x30   :  { %424 = vmatpush.msrb.mxu0 %v584_v54 }
  0x31   :  { %368 = vmatpush.bf16.msra.mxu3 %v563_v37  ;;  %vm377_vm2 = vcmp.lt.s32.totalorder %v376_v10, 40 }
  0x32   :  { %286 = vmatpush.bf16.msra.mxu2 %v554_v24  ;;  %425 = vmatpush.msrb.mxu0 %v581_v61 }
  0x34   :  { %426 = vmatpush.msrb.mxu0 %v580_v62 }
  0x35   :  { %369 = vmatpush.bf16.msra.mxu3 %v562_v38 }
  0x36   :  { %427 = vmatpush.msrb.mxu0 %v577_v0 }
  0x38   :  { %428 = vmatpush.msrb.mxu0 %v576_v1 }
  0x3a   :  { %429 = vmatpush.msrb.mxu0 %v573_v3 }
  0x3c   :  { %430 = vmatpush.msrb.mxu0 %v572_v4 }
  0x94   :  { %v122_v17 = vpop.f32.mrf.mxu0 }
  0x95   :  { %v123_v18 = vadd.f32 %v615_v16, %v122_v17 }
  0x97   :  { %619 = vtanh.f32 %v123_v18 }
  0x9c   :  { %v124_v19 = vpop.f32.mrf.mxu0 }
  0x9d   :  { %v620_v20 = vpop.eup %619 }
  0x9e   :  { %v127_v21 = vpack.c.bf16 %v620_v20, %v620_v20 }
  0xa0   :  { %204 = vmatmul.bf16.vlgmr.msra.gmra.mxu1 %v127_v21 }
 0x11d   :  { %v205_v31 = vpop.f32.mrf.mxu1 }
 0x11e   :  { %v206_v32 = vadd.f32 %v616_v30, %v205_v31 }
 0x120   :  { %621 = vtanh.f32 %v206_v32 }
 0x125   :  { %v207_v33 = vpop.f32.mrf.mxu1 }
 0x126   :  { %v622_v34 = vpop.eup %621 }
 0x127   :  { %v210_v35 = vpack.c.bf16 %v622_v34, %v622_v34 }
 0x129   :  { %287 = vmatmul.bf16.vlgmr.msra.gmra.mxu2 %v210_v35 }
 0x1ac   :  { %v288_v55 = vpop.f32.mrf.mxu2 }
 0x1ad   :  { %v289_v56 = vadd.f32 %v617_v53, %v288_v55 }
 0x1af   :  { %623 = vtanh.f32 %v289_v56 }
 0x1b4   :  { %v290_v57 = vpop.f32.mrf.mxu2 }
 0x1b5   :  { %v624_v58 = vpop.eup %623 }
 0x1b6   :  { %v293_v59 = vpack.c.bf16 %v624_v58, %v624_v58 }
 0x1b8   :  { %370 = vmatmul.bf16.vlgmr.msra.gmra.mxu3 %v293_v59 }
 0x23b   :  { %v371_v6 = vpop.f32.mrf.mxu3 }
 0x23c   :  { %v372_v7 = vadd.f32 %v618_v5, %v371_v6 }
 0x23e   :  { %v378_v9 = vmul.f32 1.442695, %v372_v7 }
 0x240   :  { %625 = vpow2.f32 %v378_v9 }
 0x243   :  { %v373_v11 = vpop.f32.mrf.mxu3 }
 0x246   :  { %v626_v12 = vpop.eup %625 }
 0x247   :  { %545 = vmatmul.msk.f32.vlgmr.msrb.gmra.mxu0 %vm377_vm2, %v626_v12 }
 0x2c4   :  { %v432_v13 = vpop.f32.mrf.mxu0 }
 0x2c5   :  { %v435_v14 = vsel %vm377_vm2, %v432_v13, 1.0 }
 0x2c6   :  { %627 = vrcp.f32 %v435_v14 }
 0x2cc   :  { %v628_v15 = vpop.eup %627 }
 0x2cd   :  { %v437_v16 = vmul.f32 %v628_v15, %v626_v12 }
 0x2cf   :  { %v438_v17 = vsel %vm377_vm2, %v437_v16, %v372_v7 }
 0x2d0   :  { %v439_v18 = vpack.c.bf16 %v438_v17, %v438_v17 }
 0x2d2   :  { %440 = vst [vmem:[%s835_s10] sm:$0xf] %v439_v18 }
 0x2d3   :  { %445 = vsyncpa [#allocation3], 1 }
 0x2d4   :  { %446 = vsyncpa [#allocation5], 1 }
 0x2d5   :  { %447 = vsyncpa [#allocation8], 1 }

</bundles_post_ra>
